<compile_context>
chip_gen: v7x
topology: tpu7x:2x2x1
jax: 0.10.0
libtpu: 0.0.40
codegen_flags: <defaults>
</compile_context>

<pallas_src>
import jax
import jax.numpy as jnp
from jax.experimental import pallas as pl
from jax.experimental.pallas import tpu as pltpu

IN_FEATURES = 2
OUT_FEATURES = 1
QUAD_PAIRS = tuple((i, j) for i in range(IN_FEATURES) for j in range(i, IN_FEATURES))
N_AUG = IN_FEATURES + len(QUAD_PAIRS)            # 2 + 3 = 5 augmented features

LANES = 128
SUBLANES = 8
MAX_BLOCK_ROWS = 256                             # 32768 samples / block (~0.4 MB VMEM dbl-buffered)


def _identity(v):
    return v


def _gaussian(v):
    return jnp.exp(-v * v)


def _square(v):
    return v * v


FUNCS = (_identity, jnp.sin, jnp.cos, jnp.tanh, _gaussian, _square)
N_FUNCS = len(FUNCS)
PROJ_COLS = N_FUNCS * OUT_FEATURES               # function-major column layout (O=1)


def _round_up(v, m):
    return ((v + m - 1) // m) * m


def mixfun_kernel(x_ref, w_ref, b_ref, pn_ref, o_ref):
    # layout: x_ref  (IN_FEATURES, block_rows, 128) VMEM — batch dense on sublanes+lanes
    #         w_ref  (N_AUG * N_FUNCS,)             SMEM, flat row-major [k, f]
    #                (flat index k*N_FUNCS+f hard-codes OUT_FEATURES == 1)
    #         b_ref  (N_FUNCS,)                     SMEM
    #         pn_ref (N_FUNCS,)                     SMEM, pre-normalized mixing weights
    #                (index 0 unused: identity branch folded into w/b in wrapper)
    #         o_ref  (block_rows, 128)              VMEM, batch dense
    x0 = x_ref[0]                                        # (block_rows, 128)
    x1 = x_ref[1]                                        # (block_rows, 128)

    # augmented features (second_order_input=True) — full (block_rows, 128) slabs
    z = (x0, x1, x0 * x0, x0 * x1, x1 * x1)              # 5 x (block_rows, 128)

    def proj(f):
        # proj_f = b[f] + sum_k w[k, f] * z_k — scalar-broadcast MADs on the VPU
        acc_p = b_ref[f] + w_ref[f] * z[0]
        for k in range(1, N_AUG):
            acc_p = acc_p + w_ref[k * N_FUNCS + f] * z[k]
        return acc_p

    # identity branch: its mixing weight is pre-folded into w/b, so just add proj
    acc = proj(0)
    for f in range(1, N_FUNCS):
        # tanh / exp go to the EUP; sin / cos are VPU polynomial expansions
        acc = acc + pn_ref[f] * FUNCS[f](proj(f))

    o_ref[...] = acc.astype(o_ref.dtype)


def mixfunn_forward(x, w, b, p, *, block_rows=None):
    B = x.shape[0]

    # ---- loop-invariant parameter prep (normalization_function=True) ----
    p_norm = (p / (jnp.sum(jnp.abs(p), axis=0, keepdims=True) + 1e-12)).reshape(-1)
    # fold the identity branch's mixing weight into its w/b column:
    #   pn0*(w0.z + b0) == (pn0*w0).z + pn0*b0
    w_eff = w.at[:, 0].multiply(p_norm[0])
    b_eff = b.reshape(-1).at[0].multiply(p_norm[0])
    w_flat = w_eff.reshape(-1)                           # (N_AUG * N_FUNCS,)

    # ---- batch tiling: rows of 128 lanes, block_rows sublanes per grid step ----
    rows_needed = _round_up(pl.cdiv(B, LANES), SUBLANES)
    if block_rows is None:
        if rows_needed >= 2 * SUBLANES:
            # split into >= 2 parallel grid steps so both v7x TensorCores get work;
            # cap the block so very large batches still pipeline through VMEM.
            block_rows = min(_round_up(pl.cdiv(rows_needed, 2), SUBLANES),
                             MAX_BLOCK_ROWS)
        else:
            block_rows = max(rows_needed, SUBLANES)
    assert block_rows % SUBLANES == 0
    n_blocks = pl.cdiv(rows_needed, block_rows)
    rows_pad = n_blocks * block_rows
    b_pad = rows_pad * LANES

    # single-pad (no zeros+scatter pre-pass); tail lanes are garbage-but-unused
    # and are sliced off below (nothing reduces over batch inside the kernel).
    xt = jnp.pad(x.T, ((0, 0), (0, b_pad - B))).reshape(IN_FEATURES, rows_pad, LANES)

    yt = pl.pallas_call(
        mixfun_kernel,
        out_shape=jax.ShapeDtypeStruct((rows_pad, LANES), jnp.float32),
        grid=(n_blocks,),
        in_specs=[
            pl.BlockSpec((IN_FEATURES, block_rows, LANES), lambda i: (0, i, 0)),
            pl.BlockSpec(memory_space=pltpu.MemorySpace.SMEM),
            pl.BlockSpec(memory_space=pltpu.MemorySpace.SMEM),
            pl.BlockSpec(memory_space=pltpu.MemorySpace.SMEM),
        ],
        out_specs=pl.BlockSpec((block_rows, LANES), lambda i: (i, 0)),
        compiler_params=pltpu.CompilerParams(
            dimension_semantics=("parallel",)),
        cost_estimate=pl.CostEstimate(
            flops=90 * b_pad,              # 3 quad products + 6x(5 MADs) + mix
            transcendentals=2 * b_pad,     # tanh + exp (sin/cos are VPU polys)
            bytes_accessed=12 * b_pad),    # 8 B in + 4 B out per sample (dense)
    )(xt, w_flat, b_eff, p_norm)

    return yt.reshape(-1)[:B].reshape(B, OUT_FEATURES)   # (B, 1)


def mixfunn_reference(x, w, b, p):
    # pure-JAX reference of the same forward pass
    quads = jnp.stack([x[:, i] * x[:, j] for (i, j) in QUAD_PAIRS], axis=-1)
    z = jnp.concatenate([x, quads], axis=-1)             # (B, 5)
    proj = z @ w + b                                     # (B, F*O)
    p_norm = p / (jnp.sum(jnp.abs(p), axis=0, keepdims=True) + 1e-12)
    y = jnp.zeros((x.shape[0], OUT_FEATURES), jnp.float32)
    for fi, fn in enumerate(FUNCS):
        cols = proj[:, fi * OUT_FEATURES:(fi + 1) * OUT_FEATURES]
        y = y + fn(cols) * p_norm[fi:fi + 1, :]
    return y


if __name__ == "__main__":
    key = jax.random.PRNGKey(0)
    kx, kw, kb, kp = jax.random.split(key, 4)

    # deterministic, PyTorch-style uniform initialization
    bound = 1.0 / (N_AUG ** 0.5)
    w = jax.random.uniform(kw, (N_AUG, PROJ_COLS), jnp.float32, -bound, bound)
    b = jax.random.uniform(kb, (1, PROJ_COLS), jnp.float32, -bound, bound)
    p = jax.random.uniform(kp, (N_FUNCS, OUT_FEATURES), jnp.float32, -1.0, 1.0)

    # small aligned batch (single block)
    B = 256
    x = jax.random.normal(kx, (B, IN_FEATURES), dtype=jnp.float32)
    y = jax.block_until_ready(mixfunn_forward(x, w, b, p))
    y_ref = mixfunn_reference(x, w, b, p)
    assert y.shape == (B, OUT_FEATURES)
    assert jnp.allclose(y, y_ref, atol=2e-4, rtol=2e-4)

    # ragged batch: exercises the padding / tail-slice path
    Br = 200
    xr = jax.random.normal(kx, (Br, IN_FEATURES), dtype=jnp.float32)
    yr = jax.block_until_ready(mixfunn_forward(xr, w, b, p))
    yr_ref = mixfunn_reference(xr, w, b, p)
    assert yr.shape == (Br, OUT_FEATURES)
    assert jnp.allclose(yr, yr_ref, atol=2e-4, rtol=2e-4)

    # multi-block batch: 2 parallel grid steps (both v7x TensorCores busy)
    Bm = 2080
    xm = jax.random.normal(kx, (Bm, IN_FEATURES), dtype=jnp.float32)
    ym = jax.block_until_ready(mixfunn_forward(xm, w, b, p))
    ym_ref = mixfunn_reference(xm, w, b, p)
    assert ym.shape == (Bm, OUT_FEATURES)
    assert jnp.allclose(ym, ym_ref, atol=2e-4, rtol=2e-4)

    print("KERNEL_OK")
</pallas_src>

<mosaic_0001>
module attributes {stable_mosaic.version = 11 : i64} {
  func.func @mixfun_kernel(%arg0: i32, %arg1: memref<2x8x128xf32, #tpu.memory_space<vmem>>, %arg2: memref<30xf32, #tpu.memory_space<smem>>, %arg3: memref<6xf32, #tpu.memory_space<smem>>, %arg4: memref<6xf32, #tpu.memory_space<smem>>, %arg5: memref<8x128xf32, #tpu.memory_space<vmem>>) attributes {dimension_semantics = [#tpu.dimension_semantics<parallel>], iteration_bounds = array<i64: 1>, scalar_prefetch = 0 : i64, scratch_operands = 0 : i64, tpu.core_type = #tpu.core_type<tc>, window_params = [{transform_indices = @transform_0, window_bounds = array<i64: 2, 8, 128>}, {transform_indices = @transform_1, window_bounds = array<i64: 30>}, {transform_indices = @transform_2, window_bounds = array<i64: 6>}, {transform_indices = @transform_3, window_bounds = array<i64: 6>}, {transform_indices = @transform_4, window_bounds = array<i64: 8, 128>}]} {
    %c0 = arith.constant 0 : index
    %c0_0 = arith.constant 0 : index
    %c0_1 = arith.constant 0 : index
    %0 = vector.load %arg1[%c0, %c0_0, %c0_1] : memref<2x8x128xf32, #tpu.memory_space<vmem>>, vector<1x8x128xf32>
    %1 = vector.shape_cast %0 : vector<1x8x128xf32> to vector<8x128xf32>
    %c1 = arith.constant 1 : index
    %c0_2 = arith.constant 0 : index
    %c0_3 = arith.constant 0 : index
    %2 = vector.load %arg1[%c1, %c0_2, %c0_3] : memref<2x8x128xf32, #tpu.memory_space<vmem>>, vector<1x8x128xf32>
    %3 = vector.shape_cast %2 : vector<1x8x128xf32> to vector<8x128xf32>
    %4 = arith.mulf %1, %1 : vector<8x128xf32>
    %5 = arith.mulf %1, %3 : vector<8x128xf32>
    %6 = arith.mulf %3, %3 : vector<8x128xf32>
    %c0_4 = arith.constant 0 : index
    %7 = memref.load %arg3[%c0_4] : memref<6xf32, #tpu.memory_space<smem>>
    %c0_5 = arith.constant 0 : index
    %8 = memref.load %arg2[%c0_5] : memref<30xf32, #tpu.memory_space<smem>>
    %9 = vector.broadcast %8 : f32 to vector<8x128xf32>
    %10 = arith.mulf %9, %1 : vector<8x128xf32>
    %11 = vector.broadcast %7 : f32 to vector<8x128xf32>
    %12 = arith.addf %11, %10 : vector<8x128xf32>
    %c6 = arith.constant 6 : index
    %13 = memref.load %arg2[%c6] : memref<30xf32, #tpu.memory_space<smem>>
    %14 = vector.broadcast %13 : f32 to vector<8x128xf32>
    %15 = arith.mulf %14, %3 : vector<8x128xf32>
    %16 = arith.addf %12, %15 : vector<8x128xf32>
    %c12 = arith.constant 12 : index
    %17 = memref.load %arg2[%c12] : memref<30xf32, #tpu.memory_space<smem>>
    %18 = vector.broadcast %17 : f32 to vector<8x128xf32>
    %19 = arith.mulf %18, %4 : vector<8x128xf32>
    %20 = arith.addf %16, %19 : vector<8x128xf32>
    %c18 = arith.constant 18 : index
    %21 = memref.load %arg2[%c18] : memref<30xf32, #tpu.memory_space<smem>>
    %22 = vector.broadcast %21 : f32 to vector<8x128xf32>
    %23 = arith.mulf %22, %5 : vector<8x128xf32>
    %24 = arith.addf %20, %23 : vector<8x128xf32>
    %c24 = arith.constant 24 : index
    %25 = memref.load %arg2[%c24] : memref<30xf32, #tpu.memory_space<smem>>
    %26 = vector.broadcast %25 : f32 to vector<8x128xf32>
    %27 = arith.mulf %26, %6 : vector<8x128xf32>
    %28 = arith.addf %24, %27 : vector<8x128xf32>
    %c1_6 = arith.constant 1 : index
    %29 = memref.load %arg4[%c1_6] : memref<6xf32, #tpu.memory_space<smem>>
    %c1_7 = arith.constant 1 : index
    %30 = memref.load %arg3[%c1_7] : memref<6xf32, #tpu.memory_space<smem>>
    %c1_8 = arith.constant 1 : index
    %31 = memref.load %arg2[%c1_8] : memref<30xf32, #tpu.memory_space<smem>>
    %32 = vector.broadcast %31 : f32 to vector<8x128xf32>
    %33 = arith.mulf %32, %1 : vector<8x128xf32>
    %34 = vector.broadcast %30 : f32 to vector<8x128xf32>
    %35 = arith.addf %34, %33 : vector<8x128xf32>
    %c7 = arith.constant 7 : index
    %36 = memref.load %arg2[%c7] : memref<30xf32, #tpu.memory_space<smem>>
    %37 = vector.broadcast %36 : f32 to vector<8x128xf32>
    %38 = arith.mulf %37, %3 : vector<8x128xf32>
    %39 = arith.addf %35, %38 : vector<8x128xf32>
    %c13 = arith.constant 13 : index
    %40 = memref.load %arg2[%c13] : memref<30xf32, #tpu.memory_space<smem>>
    %41 = vector.broadcast %40 : f32 to vector<8x128xf32>
    %42 = arith.mulf %41, %4 : vector<8x128xf32>
    %43 = arith.addf %39, %42 : vector<8x128xf32>
    %c19 = arith.constant 19 : index
    %44 = memref.load %arg2[%c19] : memref<30xf32, #tpu.memory_space<smem>>
    %45 = vector.broadcast %44 : f32 to vector<8x128xf32>
    %46 = arith.mulf %45, %5 : vector<8x128xf32>
    %47 = arith.addf %43, %46 : vector<8x128xf32>
    %c25 = arith.constant 25 : index
    %48 = memref.load %arg2[%c25] : memref<30xf32, #tpu.memory_space<smem>>
    %49 = vector.broadcast %48 : f32 to vector<8x128xf32>
    %50 = arith.mulf %49, %6 : vector<8x128xf32>
    %51 = arith.addf %47, %50 : vector<8x128xf32>
    %52 = math.sin %51 : vector<8x128xf32>
    %53 = vector.broadcast %29 : f32 to vector<8x128xf32>
    %54 = arith.mulf %53, %52 : vector<8x128xf32>
    %55 = arith.addf %28, %54 : vector<8x128xf32>
    %c2 = arith.constant 2 : index
    %56 = memref.load %arg4[%c2] : memref<6xf32, #tpu.memory_space<smem>>
    %c2_9 = arith.constant 2 : index
    %57 = memref.load %arg3[%c2_9] : memref<6xf32, #tpu.memory_space<smem>>
    %c2_10 = arith.constant 2 : index
    %58 = memref.load %arg2[%c2_10] : memref<30xf32, #tpu.memory_space<smem>>
    %59 = vector.broadcast %58 : f32 to vector<8x128xf32>
    %60 = arith.mulf %59, %1 : vector<8x128xf32>
    %61 = vector.broadcast %57 : f32 to vector<8x128xf32>
    %62 = arith.addf %61, %60 : vector<8x128xf32>
    %c8 = arith.constant 8 : index
    %63 = memref.load %arg2[%c8] : memref<30xf32, #tpu.memory_space<smem>>
    %64 = vector.broadcast %63 : f32 to vector<8x128xf32>
    %65 = arith.mulf %64, %3 : vector<8x128xf32>
    %66 = arith.addf %62, %65 : vector<8x128xf32>
    %c14 = arith.constant 14 : index
    %67 = memref.load %arg2[%c14] : memref<30xf32, #tpu.memory_space<smem>>
    %68 = vector.broadcast %67 : f32 to vector<8x128xf32>
    %69 = arith.mulf %68, %4 : vector<8x128xf32>
    %70 = arith.addf %66, %69 : vector<8x128xf32>
    %c20 = arith.constant 20 : index
    %71 = memref.load %arg2[%c20] : memref<30xf32, #tpu.memory_space<smem>>
    %72 = vector.broadcast %71 : f32 to vector<8x128xf32>
    %73 = arith.mulf %72, %5 : vector<8x128xf32>
    %74 = arith.addf %70, %73 : vector<8x128xf32>
    %c26 = arith.constant 26 : index
    %75 = memref.load %arg2[%c26] : memref<30xf32, #tpu.memory_space<smem>>
    %76 = vector.broadcast %75 : f32 to vector<8x128xf32>
    %77 = arith.mulf %76, %6 : vector<8x128xf32>
    %78 = arith.addf %74, %77 : vector<8x128xf32>
    %79 = math.cos %78 : vector<8x128xf32>
    %80 = vector.broadcast %56 : f32 to vector<8x128xf32>
    %81 = arith.mulf %80, %79 : vector<8x128xf32>
    %82 = arith.addf %55, %81 : vector<8x128xf32>
    %c3 = arith.constant 3 : index
    %83 = memref.load %arg4[%c3] : memref<6xf32, #tpu.memory_space<smem>>
    %c3_11 = arith.constant 3 : index
    %84 = memref.load %arg3[%c3_11] : memref<6xf32, #tpu.memory_space<smem>>
    %c3_12 = arith.constant 3 : index
    %85 = memref.load %arg2[%c3_12] : memref<30xf32, #tpu.memory_space<smem>>
    %86 = vector.broadcast %85 : f32 to vector<8x128xf32>
    %87 = arith.mulf %86, %1 : vector<8x128xf32>
    %88 = vector.broadcast %84 : f32 to vector<8x128xf32>
    %89 = arith.addf %88, %87 : vector<8x128xf32>
    %c9 = arith.constant 9 : index
    %90 = memref.load %arg2[%c9] : memref<30xf32, #tpu.memory_space<smem>>
    %91 = vector.broadcast %90 : f32 to vector<8x128xf32>
    %92 = arith.mulf %91, %3 : vector<8x128xf32>
    %93 = arith.addf %89, %92 : vector<8x128xf32>
    %c15 = arith.constant 15 : index
    %94 = memref.load %arg2[%c15] : memref<30xf32, #tpu.memory_space<smem>>
    %95 = vector.broadcast %94 : f32 to vector<8x128xf32>
    %96 = arith.mulf %95, %4 : vector<8x128xf32>
    %97 = arith.addf %93, %96 : vector<8x128xf32>
    %c21 = arith.constant 21 : index
    %98 = memref.load %arg2[%c21] : memref<30xf32, #tpu.memory_space<smem>>
    %99 = vector.broadcast %98 : f32 to vector<8x128xf32>
    %100 = arith.mulf %99, %5 : vector<8x128xf32>
    %101 = arith.addf %97, %100 : vector<8x128xf32>
    %c27 = arith.constant 27 : index
    %102 = memref.load %arg2[%c27] : memref<30xf32, #tpu.memory_space<smem>>
    %103 = vector.broadcast %102 : f32 to vector<8x128xf32>
    %104 = arith.mulf %103, %6 : vector<8x128xf32>
    %105 = arith.addf %101, %104 : vector<8x128xf32>
    %106 = math.tanh %105 : vector<8x128xf32>
    %107 = vector.broadcast %83 : f32 to vector<8x128xf32>
    %108 = arith.mulf %107, %106 : vector<8x128xf32>
    %109 = arith.addf %82, %108 : vector<8x128xf32>
    %c4 = arith.constant 4 : index
    %110 = memref.load %arg4[%c4] : memref<6xf32, #tpu.memory_space<smem>>
    %c4_13 = arith.constant 4 : index
    %111 = memref.load %arg3[%c4_13] : memref<6xf32, #tpu.memory_space<smem>>
    %c4_14 = arith.constant 4 : index
    %112 = memref.load %arg2[%c4_14] : memref<30xf32, #tpu.memory_space<smem>>
    %113 = vector.broadcast %112 : f32 to vector<8x128xf32>
    %114 = arith.mulf %113, %1 : vector<8x128xf32>
    %115 = vector.broadcast %111 : f32 to vector<8x128xf32>
    %116 = arith.addf %115, %114 : vector<8x128xf32>
    %c10 = arith.constant 10 : index
    %117 = memref.load %arg2[%c10] : memref<30xf32, #tpu.memory_space<smem>>
    %118 = vector.broadcast %117 : f32 to vector<8x128xf32>
    %119 = arith.mulf %118, %3 : vector<8x128xf32>
    %120 = arith.addf %116, %119 : vector<8x128xf32>
    %c16 = arith.constant 16 : index
    %121 = memref.load %arg2[%c16] : memref<30xf32, #tpu.memory_space<smem>>
    %122 = vector.broadcast %121 : f32 to vector<8x128xf32>
    %123 = arith.mulf %122, %4 : vector<8x128xf32>
    %124 = arith.addf %120, %123 : vector<8x128xf32>
    %c22 = arith.constant 22 : index
    %125 = memref.load %arg2[%c22] : memref<30xf32, #tpu.memory_space<smem>>
    %126 = vector.broadcast %125 : f32 to vector<8x128xf32>
    %127 = arith.mulf %126, %5 : vector<8x128xf32>
    %128 = arith.addf %124, %127 : vector<8x128xf32>
    %c28 = arith.constant 28 : index
    %129 = memref.load %arg2[%c28] : memref<30xf32, #tpu.memory_space<smem>>
    %130 = vector.broadcast %129 : f32 to vector<8x128xf32>
    %131 = arith.mulf %130, %6 : vector<8x128xf32>
    %132 = arith.addf %128, %131 : vector<8x128xf32>
    %cst = arith.constant 0.000000e+00 : f32
    %133 = vector.broadcast %cst : f32 to vector<8x128xf32>
    %134 = arith.subf %133, %132 : vector<8x128xf32>
    %135 = arith.mulf %134, %132 : vector<8x128xf32>
    %136 = math.exp %135 : vector<8x128xf32>
    %137 = vector.broadcast %110 : f32 to vector<8x128xf32>
    %138 = arith.mulf %137, %136 : vector<8x128xf32>
    %139 = arith.addf %109, %138 : vector<8x128xf32>
    %c5 = arith.constant 5 : index
    %140 = memref.load %arg4[%c5] : memref<6xf32, #tpu.memory_space<smem>>
    %c5_15 = arith.constant 5 : index
    %141 = memref.load %arg3[%c5_15] : memref<6xf32, #tpu.memory_space<smem>>
    %c5_16 = arith.constant 5 : index
    %142 = memref.load %arg2[%c5_16] : memref<30xf32, #tpu.memory_space<smem>>
    %143 = vector.broadcast %142 : f32 to vector<8x128xf32>
    %144 = arith.mulf %143, %1 : vector<8x128xf32>
    %145 = vector.broadcast %141 : f32 to vector<8x128xf32>
    %146 = arith.addf %145, %144 : vector<8x128xf32>
    %c11 = arith.constant 11 : index
    %147 = memref.load %arg2[%c11] : memref<30xf32, #tpu.memory_space<smem>>
    %148 = vector.broadcast %147 : f32 to vector<8x128xf32>
    %149 = arith.mulf %148, %3 : vector<8x128xf32>
    %150 = arith.addf %146, %149 : vector<8x128xf32>
    %c17 = arith.constant 17 : index
    %151 = memref.load %arg2[%c17] : memref<30xf32, #tpu.memory_space<smem>>
    %152 = vector.broadcast %151 : f32 to vector<8x128xf32>
    %153 = arith.mulf %152, %4 : vector<8x128xf32>
    %154 = arith.addf %150, %153 : vector<8x128xf32>
    %c23 = arith.constant 23 : index
    %155 = memref.load %arg2[%c23] : memref<30xf32, #tpu.memory_space<smem>>
    %156 = vector.broadcast %155 : f32 to vector<8x128xf32>
    %157 = arith.mulf %156, %5 : vector<8x128xf32>
    %158 = arith.addf %154, %157 : vector<8x128xf32>
    %c29 = arith.constant 29 : index
    %159 = memref.load %arg2[%c29] : memref<30xf32, #tpu.memory_space<smem>>
    %160 = vector.broadcast %159 : f32 to vector<8x128xf32>
    %161 = arith.mulf %160, %6 : vector<8x128xf32>
    %162 = arith.addf %158, %161 : vector<8x128xf32>
    %163 = arith.mulf %162, %162 : vector<8x128xf32>
    %164 = vector.broadcast %140 : f32 to vector<8x128xf32>
    %165 = arith.mulf %164, %163 : vector<8x128xf32>
    %166 = arith.addf %139, %165 : vector<8x128xf32>
    %c0_17 = arith.constant 0 : index
    %c0_18 = arith.constant 0 : index
    %167 = vector.load %arg5[%c0_17, %c0_18] : memref<8x128xf32, #tpu.memory_space<vmem>>, vector<8x128xf32>
    tpu.vector_store %arg5[%c0_17, %c0_18], %166 {strides = array<i32>} : memref<8x128xf32, #tpu.memory_space<vmem>>, vector<8x128xf32>,
    return
  }
  func.func @transform_0(%arg0: i32) -> (i32, i32, i32) {
    %c0_i32 = arith.constant 0 : i32
    %c0_i32_0 = arith.constant 0 : i32
    %c0_i32_1 = arith.constant 0 : i32
    return %c0_i32, %arg0, %c0_i32_0 : i32, i32, i32
  }
  func.func @transform_1(%arg0: i32) -> i32 {
    %c0_i32 = arith.constant 0 : i32
    %c0_i32_0 = arith.constant 0 : i32
    return %c0_i32 : i32
  }
  func.func @transform_2(%arg0: i32) -> i32 {
    %c0_i32 = arith.constant 0 : i32
    %c0_i32_0 = arith.constant 0 : i32
    return %c0_i32 : i32
  }
  func.func @transform_3(%arg0: i32) -> i32 {
    %c0_i32 = arith.constant 0 : i32
    %c0_i32_0 = arith.constant 0 : i32
    return %c0_i32 : i32
  }
  func.func @transform_4(%arg0: i32) -> (i32, i32) {
    %c0_i32 = arith.constant 0 : i32
    %c0_i32_0 = arith.constant 0 : i32
    return %arg0, %c0_i32 : i32, i32
  }
}

</mosaic_0001>

<bundles_post_ra>
// kernel: tpu_custom_call.1
= control target key start
LH: loop header
LB: loop body
LE: loop exit
PB: predicated region body
PF: predicated region fallthrough
CT: control target
= control target key end

     0   :  { %9 = vsyncpa [#allocation3], 0  ;;  %s937_s0 = inlined_call_operand.hbm [shape: f32[2,8,128], index: 0, kind: input, shape index: {}]   ;;  %s938_s1 = inlined_call_operand.vmem [shape: f32[30], index: 1, kind: input, shape index: {}]   ;;  %s939_s2 = inlined_call_operand.vmem [shape: f32[6], index: 2, kind: input, shape index: {}]   ;;  %s940_s3 = inlined_call_operand.vmem [shape: f32[6], index: 3, kind: input, shape index: {}]   ;;  %s941_s4 = inlined_call_operand.hbm [shape: f32[8,128], index: 4, kind: output, shape index: {}]  }
   0x1   :  { %10 = vsyncpa [#allocation5], 0 }
   0x2   :  { %11 = vsyncpa [#allocation8], 0  ;;  %s41_s17 = sshll.u32 %s939_s2, 4  ;;  %s42_s17 = int_to_ptr.vmem [resolvable:$true] %s41_s17 }
   0x3   :  { %12 = vsyncpa [#allocation4], 0  ;;  %s537_s18 = scalar_lea.vmem %s42_s17, 16  ;;  %p542_p1 = scmp.lt.s32.totalorder %s42_s17, %s42_s17 }
   0x4   :  { %p538_p0 = scmp.ne.s32.totalorder %s42_s17, %s537_s18  ;;  %p543_p2 = scmp.lt.s32.totalorder %s537_s18, %s537_s18 }
   0x6   :  { %p544_p3 = por %p543_p2, %p542_p1 }
   0x8   :  { %p545_p4 = pnand %p544_p3, %p538_p0 }
   0xa   :  { %548 = shalt.err (!%p545_p4)
}
   0xb   :  { %s625_s19 = smov [#allocation7]   ;;  %s626_s20 = smov [#allocation2]  }
   0xc   :  { %44 = dma.vmem_to_smem %s42_s17, 16, %s625_s19, [#allocation8]  }
   0xd   :  { %s18_s21 = sshll.u32 %s626_s20, 4  ;;  %s549_s24 = scalar_lea.hbm %s937_s0, 256  ;;  %s19_s21 = int_to_ptr.vmem [resolvable:$true] %s18_s21 }
   0xe   :  { %p550_p5 = scmp.ne.s32.totalorder %s937_s0, %s549_s24  ;;  %p553_p6 = scmp.lt.u32.totalorder %s549_s24, %s937_s0 }
  0x10   :  { %p555_p7 = pnand %p553_p6, %p550_p5 }
  0x12   :  { %558 = shalt.err (!%p555_p7)
}
  0x13   :  { %s559_s28 = scalar_lea.vmem %s19_s21, 256  ;;  %p564_p9 = scmp.lt.s32.totalorder %s19_s21, %s19_s21 }
  0x14   :  { %p560_p8 = scmp.ne.s32.totalorder %s19_s21, %s559_s28  ;;  %p565_p10 = scmp.lt.s32.totalorder %s559_s28, %s559_s28 }
  0x16   :  { %p566_p11 = por %p565_p10, %p564_p9 }
  0x18   :  { %p567_p12 = pnand %p566_p11, %p560_p8 }
  0x1a   :  { %570 = shalt.err (!%p567_p12)
}
  0x1b   :  { %s627_s29 = smov 128   ;;  %s628_s30 = smov 8  }
  0x1c   :  { %24 = dma.hbm_to_vmem [thread:$0]  %s937_s0, 256, %s19_s21, [#allocation3], %s627_s29, %s627_s29, %s628_s30  }
  0x1d   :  { %s31_s9 = sshll.u32 %s938_s1, 4  ;;  %s51_s12 = sshll.u32 %s940_s3, 4  ;;  %s32_s9 = int_to_ptr.vmem [resolvable:$true] %s31_s9  ;;  %s52_s12 = int_to_ptr.vmem [resolvable:$true] %s51_s12 }
  0x1e   :  { %s571_s13 = scalar_lea.vmem %s32_s9, 16  ;;  %p576_p0 = scmp.lt.s32.totalorder %s32_s9, %s32_s9 }
  0x1f   :  { %p572_p13 = scmp.ne.s32.totalorder %s32_s9, %s571_s13  ;;  %p577_p1 = scmp.lt.s32.totalorder %s571_s13, %s571_s13 }
  0x21   :  { %p578_p2 = por %p577_p1, %p576_p0 }
  0x23   :  { %p579_p3 = pnand %p578_p2, %p572_p13 }
  0x25   :  { %582 = shalt.err (!%p579_p3)
}
  0x26   :  { %s629_s14 = smov [#allocation6]   ;;  %s583_s0 = scalar_lea.vmem %s52_s12, 16 }
  0x27   :  { %34 = dma.vmem_to_smem %s32_s9, 16, %s629_s14, [#allocation5]  }
  0x28   :  { %p584_p4 = scmp.ne.s32.totalorder %s52_s12, %s583_s0  ;;  %p588_p5 = scmp.lt.s32.totalorder %s52_s12, %s52_s12 }
  0x29   :  { %p589_p6 = scmp.lt.s32.totalorder %s583_s0, %s583_s0 }
  0x2b   :  { %p590_p7 = por %p589_p6, %p588_p5 }
  0x2d   :  { %p591_p8 = pnand %p590_p7, %p584_p4 }
  0x2f   :  { %594 = shalt.err (!%p591_p8)
}
  0x30   :  { %s630_s1 = smov [#allocation9]  }
  0x31   :  { %54 = dma.vmem_to_smem %s52_s12, 16, %s630_s1, [#allocation8]  }
  0x32   :  { %617 = dma.done.wait [#allocation3], 256  }
  0x33   :  { %618 = vsyncadd [#allocation3], 4294967040 }
  0x34   :  { %619 = dma.done.wait [#allocation5], 16  }
  0x35   :  { %620 = vsyncadd [#allocation5], 4294967280 }
  0x36   :  { %621 = dma.done.wait [#allocation8], 32  }
  0x37   :  { %622 = vsyncadd [#allocation8], 4294967264 }
  0x38   :  { %67 = sfence }
  0x39   :  { %s74_s3 = sld [smem:[#allocation7]]  ;;  %s457_s16 = sld [smem:[#allocation6 + $0x6]]  ;;  %v696_v0 = vld [vmem:[#allocation2] sm:$0xff]  ;;  %v700_v3 = vld [vmem:[#allocation2 + $0x8] sm:$0xff] }
  0x3a   :  { %s75_s15 = sld [smem:[#allocation6]]  ;;  %s458_s17 = sld [smem:[#allocation6 + $0xc]]  ;;  %v704_v4 = vmul.f32 %v696_v0, %v696_v0  ;;  %v713_v8 = vmul.f32 %v700_v3, %v696_v0  ;;  %v722_v11 = vmul.f32 %v700_v3, %v700_v3 }
  0x3b   :  { %s459_s18 = sld [smem:[#allocation6 + $0x12]]  ;;  %s684_s19 = sld [smem:[#allocation6 + $0x18]] }
  0x3c   :  { %s686_s20 = sld [smem:[#allocation7 + $0x1]]  ;;  %s690_s22 = sld [smem:[#allocation6 + $0x7]] }
  0x3d   :  { %s688_s21 = sld [smem:[#allocation6 + $0x1]]  ;;  %s692_s23 = sld [smem:[#allocation6 + $0xd]] }
  0x3e   :  { %s694_s24 = sld [smem:[#allocation6 + $0x13]]  ;;  %s698_s25 = sld [smem:[#allocation6 + $0x19]] }
  0x3f   :  { %v78_v2 = vstv %s74_s3  ;;  %v81_v6 = vstv %s457_s16  ;;  %s707_s2 = sld [smem:[#allocation7 + $0x2]]  ;;  %s716_s27 = sld [smem:[#allocation6 + $0x8]] }
  0x40   :  { %v76_v1 = vstv %s75_s15  ;;  %v85_v7 = vstv %s458_s17  ;;  %s709_s26 = sld [smem:[#allocation6 + $0x2]]  ;;  %v82_v9 = vmul.f32 %v81_v6, %v700_v3  ;;  %s718_s28 = sld [smem:[#allocation6 + $0xe]] }
  0x41   :  { %v77_v5 = vmul.f32 %v76_v1, %v696_v0  ;;  %v89_v10 = vstv %s459_s18  ;;  %v86_v13 = vmul.f32 %v85_v7, %v704_v4  ;;  %v93_v14 = vstv %s684_s19  ;;  %s726_s29 = sld [smem:[#allocation6 + $0x14]]  ;;  %s732_s30 = sld [smem:[#allocation6 + $0x1a]] }
  0x42   :  { %v90_v15 = vmul.f32 %v89_v10, %v713_v8  ;;  %v101_v17 = vstv %s686_s20  ;;  %v104_v18 = vstv %s690_s22  ;;  %s734_s5 = sld [smem:[#allocation7 + $0x3]]  ;;  %s741_s7 = sld [smem:[#allocation6 + $0x9]]  ;;  %v94_v23 = vmul.f32 %v93_v14, %v722_v11 }
  0x43   :  { %v79_v12 = vadd.f32 %v78_v2, %v77_v5  ;;  %v99_v16 = vstv %s688_s21  ;;  %v105_v21 = vmul.f32 %v104_v18, %v700_v3  ;;  %v108_v22 = vstv %s692_s23  ;;  %s739_s6 = sld [smem:[#allocation6 + $0x3]]  ;;  %s746_s8 = sld [smem:[#allocation6 + $0xf]] }
  0x44   :  { %v100_v20 = vmul.f32 %v99_v16, %v696_v0  ;;  %v109_v24 = vmul.f32 %v108_v22, %v704_v4  ;;  %v112_v25 = vstv %s694_s24  ;;  %v116_v29 = vstv %s698_s25  ;;  %s754_s9 = sld [smem:[#allocation6 + $0x15]]  ;;  %s756_s10 = sld [smem:[#allocation6 + $0x4]] }
  0x45   :  { %v83_v19 = vadd.f32 %v82_v9, %v79_v12  ;;  %v113_v28 = vmul.f32 %v112_v25, %v713_v8  ;;  %v231_v31 = vstv %s707_s2  ;;  %v234_v32 = vstv %s716_s27  ;;  %s760_s11 = sld [smem:[#allocation7 + $0x4]]  ;;  %s762_s12 = sld [smem:[#allocation6 + $0xa]] }
  0x46   :  { %v102_v27 = vadd.f32 %v101_v17, %v100_v20  ;;  %v229_v30 = vstv %s709_s26  ;;  %v238_v33 = vstv %s718_s28  ;;  %v235_v37 = vmul.f32 %v234_v32, %v700_v3  ;;  %s766_s13 = sld [smem:[#allocation6 + $0x1b]]  ;;  %s771_s14 = sld [smem:[#allocation6 + $0x10]] }
  0x47   :  { %v87_v26 = vadd.f32 %v86_v13, %v83_v19  ;;  %v230_v36 = vmul.f32 %v229_v30, %v696_v0  ;;  %v117_v38 = vmul.f32 %v116_v29, %v722_v11  ;;  %v239_v39 = vmul.f32 %v238_v33, %v704_v4  ;;  %s779_s0 = sld [smem:[#allocation6 + $0x16]]  ;;  %s793_s1 = sld [smem:[#allocation6 + $0x1c]] }
  0x48   :  { %v106_v35 = vadd.f32 %v105_v21, %v102_v27  ;;  %v242_v43 = vstv %s726_s29  ;;  %v246_v44 = vstv %s732_s30  ;;  %v360_v46 = vstv %s734_s5  ;;  %s840_s3 = sld [smem:[#allocation6 + $0x5]]  ;;  %s848_s16 = sld [smem:[#allocation6 + $0xb]] }
  0x49   :  { %v91_v34 = vadd.f32 %v90_v15, %v87_v26  ;;  %v232_v42 = vadd.f32 %v231_v31, %v230_v36  ;;  %v358_v45 = vstv %s739_s6  ;;  %v363_v47 = vstv %s741_s7  ;;  %s843_s15 = sld [smem:[#allocation7 + $0x5]]  ;;  %s850_s17 = sld [smem:[#allocation6 + $0x11]] }
  0x4a   :  { %v110_v41 = vadd.f32 %v109_v24, %v106_v35  ;;  %v359_v50 = vmul.f32 %v358_v45, %v696_v0  ;;  %v367_v51 = vstv %s746_s8  ;;  %v243_v52 = vmul.f32 %v242_v43, %v713_v8  ;;  %s854_s18 = sld [smem:[#allocation6 + $0x17]]  ;;  %s503_s19 = sld [smem:[#allocation6 + $0x1d]] }
  0x4b   :  { %v768_v40 = vadd.f32 %v94_v23, %v91_v34  ;;  %v236_v49 = vadd.f32 %v235_v37, %v232_v42  ;;  %v364_v53 = vmul.f32 %v363_v47, %v700_v3  ;;  %v247_v56 = vmul.f32 %v246_v44, %v722_v11  ;;  %s461_s20 = sld [smem:[#allocation9 + $0x1]]  ;;  %s472_s21 = sld [smem:[#allocation9 + $0x2]] }
  0x4c   :  { %v114_v48 = vadd.f32 %v113_v28, %v110_v41  ;;  %v361_v57 = vadd.f32 %v360_v46, %v359_v50  ;;  %v368_v58 = vmul.f32 %v367_v51, %v704_v4  ;;  %v371_v59 = vstv %s754_s9  ;;  %s483_s22 = sld [smem:[#allocation9 + $0x3]]  ;;  %s490_s23 = sld [smem:[#allocation9 + $0x4]] }
  0x4d   :  { %v240_v55 = vadd.f32 %v239_v39, %v236_v49  ;;  %v385_v60 = vstv %s756_s10  ;;  %v390_v61 = vstv %s762_s12  ;;  %v387_v1 = vstv %s760_s11  ;;  %s497_s24 = sld [smem:[#allocation9 + $0x5]]  ;;  %s637_s25 = smov [#allocation10]  }
  0x4e   :  { %v783_v54 = vadd.f32 %v117_v38, %v114_v48  ;;  %v365_v5 = vadd.f32 %v364_v53, %v361_v57  ;;  %v375_v6 = vstv %s766_s13  ;;  %v386_v7 = vmul.f32 %v385_v60, %v696_v0  ;;  %s446_s2 = sshll.u32 %s637_s25, 4  ;;  %s447_s2 = int_to_ptr.vmem [resolvable:$true] %s446_s2 }
  0x4f   :  { %v244_v2 = vadd.f32 %v243_v52, %v240_v55  ;;  %v372_v10 = vmul.f32 %v371_v59, %v713_v8  ;;  %v391_v12 = vmul.f32 %v390_v61, %v700_v3  ;;  %v394_v13 = vstv %s771_s14  ;;  %s595_s26 = scalar_lea.vmem %s447_s2, 128  ;;  %p600_p10 = scmp.lt.s32.totalorder %s447_s2, %s447_s2 }
  0x50   :  { %v119_v62 = vand.u32 2147483647, %v783_v54  ;;  %v122_v63 = vand.u32 2139095040, %v783_v54  ;;  %v369_v16 = vadd.f32 %v368_v58, %v365_v5  ;;  %v388_v17 = vadd.f32 %v387_v1, %v386_v7  ;;  %p596_p9 = scmp.ne.s32.totalorder %s447_s2, %s595_s26  ;;  %p601_p11 = scmp.lt.s32.totalorder %s595_s26, %s595_s26 }
  0x51   :  { %v802_v15 = vadd.f32 %v247_v56, %v244_v2  ;;  %v376_v19 = vmul.f32 %v375_v6, %v722_v11  ;;  %v395_v20 = vmul.f32 %v394_v13, %v704_v4  ;;  %v398_v21 = vstv %s779_s0 }
  0x52   :  { %v123_v9 = vshrl.u32 %v122_v63, 23  ;;  %v126_v14 = vand.u32 8388607, %v119_v62  ;;  %v373_v25 = vadd.f32 %v372_v10, %v369_v16  ;;  %v392_v26 = vadd.f32 %v391_v12, %v388_v17  ;;  %p602_p12 = por %p601_p11, %p600_p10 }
  0x53   :  { %v249_v22 = vand.u32 2147483647, %v802_v15  ;;  %v252_v23 = vand.u32 2139095040, %v802_v15  ;;  %v399_v30 = vmul.f32 %v398_v21, %v713_v8  ;;  %v402_v33 = vstv %s793_s1 }
  0x54   :  { %v468_v18 = vadd.s32 4294967169, %v123_v9  ;;  %v127_v27 = vor.u32 8388608, %v126_v14  ;;  %v812_v31 = vadd.f32 %v376_v19, %v373_v25  ;;  %v396_v32 = vadd.f32 %v395_v20, %v392_v26  ;;  %p603_p13 = pnand %p602_p12, %p596_p9 }
  0x55   :  { %v253_v28 = vshrl.u32 %v252_v23, 23  ;;  %v256_v29 = vand.u32 8388607, %v249_v22  ;;  %v403_v43 = vmul.f32 %v402_v33, %v722_v11  ;;  %v631_v45 = vmov 683565275  }
  0x56   :  { %v129_v24 = vadd.s32 1, %v468_v18  ;;  %v400_v38 = vadd.f32 %v399_v30, %v396_v32  ;;  %v815_v39 = vshll.u32 %v127_v27, 8  ;;  %v632_v47 = vmov 2475754826  }
  0x57   :  { %v479_v35 = vadd.s32 4294967169, %v253_v28  ;;  %v257_v41 = vor.u32 8388608, %v256_v29  ;;  %v633_v49 = vmov 2131351028   ;;  %v634_v51 = vmov 2102212464  }
  0x58   :  { %vm130_vm0 = vcmp.gt.s32.totalorder %v129_v24, 0  ;;  %v635_v53 = vmov 920167782   ;;  %v636_v61 = vmov 1326507024   ;;  %v818_v10 = vadd.f32 %v403_v43, %v400_v38 }
  0x59   :  { %v131_v34 = vsel %vm130_vm0, %v129_v24, 0  ;;  %v259_v42 = vadd.s32 1, %v479_v35  ;;  %v829_v28 = vshll.u32 %v257_v41, 8  ;;  %vm121_vm14 = vcmp.lt.s32.totalorder %v783_v54, 0 }
  0x5a   :  { %v132_v36 = vshrl.u32 %v131_v34, 5  ;;  %v133_v37 = vand.u32 31, %v131_v34  ;;  %vm120_vm15 = vcmp.le.f32.partialorder %v119_v62, 0.7853982  ;;  %v405_v62 = vsub.f32 0.0, %v818_v10 }
  0x5b   :  { %vm260_vm5 = vcmp.gt.s32.totalorder %v259_v42, 0  ;;  %vm251_vm0 = vcmp.lt.s32.totalorder %v802_v15, 0 }
  0x5c   :  { %v134_v44 = vsub.s32 32, %v133_v37  ;;  %v136_v46 = vshll.u32 %v631_v45, %v133_v37  ;;  %v139_v48 = vshll.u32 %v632_v47, %v133_v37  ;;  %v142_v50 = vshll.u32 %v633_v49, %v133_v37 }
  0x5d   :  { %v145_v52 = vshll.u32 %v634_v51, %v133_v37  ;;  %v148_v55 = vshll.u32 %v635_v53, %v133_v37  ;;  %vm151_vm1 = vcmp.lt.s32.totalorder %v132_v36, 1  ;;  %vm152_vm2 = vcmp.lt.s32.totalorder %v132_v36, 2 }
  0x5e   :  { %v135_v56 = vshrl.u32 %v631_v45, %v134_v44  ;;  %v137_v57 = vshrl.u32 %v632_v47, %v134_v44  ;;  %v140_v58 = vshrl.u32 %v633_v49, %v134_v44  ;;  %v143_v59 = vshrl.u32 %v634_v51, %v134_v44 }
  0x5f   :  { %v146_v60 = vshrl.u32 %v635_v53, %v134_v44  ;;  %v149_v63 = vshrl.u32 %v636_v61, %v134_v44  ;;  %vm153_vm3 = vcmp.lt.s32.totalorder %v132_v36, 3  ;;  %vm154_vm4 = vcmp.lt.s32.totalorder %v132_v36, 4 }
  0x60   :  { %v138_v1 = vor.u32 %v137_v57, %v136_v46  ;;  %v141_v2 = vor.u32 %v140_v58, %v139_v48  ;;  %v144_v5 = vor.u32 %v143_v59, %v142_v50  ;;  %v261_v9 = vsel %vm260_vm5, %v259_v42, 0 }
  0x61   :  { %v147_v6 = vor.u32 %v146_v60, %v145_v52  ;;  %v150_v7 = vor.u32 %v149_v63, %v148_v55  ;;  %v262_v23 = vshrl.u32 %v261_v9, 5  ;;  %v263_v24 = vand.u32 31, %v261_v9 }
  0x62   :  { %v155_v12 = vsel %vm151_vm1, %v135_v56, %v138_v1  ;;  %v156_v13 = vsel %vm154_vm4, %v144_v5, 2102212464  ;;  %v159_v14 = vsel %vm151_vm1, %v138_v1, %v141_v2  ;;  %v163_v16 = vsel %vm151_vm1, %v141_v2, %v144_v5 }
  0x63   :  { %v157_v17 = vsel %vm153_vm3, %v141_v2, %v156_v13  ;;  %v160_v18 = vsel %vm154_vm4, %v147_v6, 920167782  ;;  %v164_v19 = vsel %vm154_vm4, %v150_v7, 1326507024  ;;  %v264_v34 = vsub.s32 32, %v263_v24 }
  0x64   :  { %v161_v20 = vsel %vm153_vm3, %v144_v5, %v160_v18  ;;  %v165_v21 = vsel %vm153_vm3, %v147_v6, %v164_v19  ;;  %v158_v25 = vsel %vm152_vm2, %v155_v12, %v157_v17  ;;  %v266_v35 = vshll.u32 %v631_v45, %v263_v24 }
  0x65   :  { %v162_v26 = vsel %vm152_vm2, %v159_v14, %v161_v20  ;;  %v166_v27 = vsel %vm152_vm2, %v163_v16, %v165_v21  ;;  %v269_v37 = vshll.u32 %v632_v47, %v263_v24  ;;  %v272_v38 = vshll.u32 %v633_v49, %v263_v24 }
  0x66   :  { %v832_v29 = vmul.u32.u64.low %v815_v39, %v166_v27  ;;  %v833_v30 = vmul.u32.u64.high %v815_v39, %v166_v27, %v832_v29  ;;  %v836_v32 = vmul.u32.u64.low %v815_v39, %v162_v26  ;;  %v837_v33 = vmul.u32.u64.high %v815_v39, %v162_v26, %v836_v32 }
  0x67   :  { %v174_v36 = vmul.u32 %v815_v39, %v158_v25  ;;  %v275_v42 = vshll.u32 %v634_v51, %v263_v24  ;;  %v278_v41 = vshll.u32 %v635_v53, %v263_v24  ;;  %vm281_vm6 = vcmp.lt.s32.totalorder %v262_v23, 1 }
  0x68   :  { %v265_v43 = vshrl.u32 %v631_v45, %v264_v34  ;;  %v267_v44 = vshrl.u32 %v632_v47, %v264_v34  ;;  %v270_v46 = vshrl.u32 %v633_v49, %v264_v34  ;;  %v273_v48 = vshrl.u32 %v634_v51, %v264_v34 }
  0x69   :  { %vm176_vm7 = vc.u32 %v833_v30, %v836_v32  ;;  %v177_v50 = vadd.s32 1, %v837_v33  ;;  %v276_v52 = vshrl.u32 %v635_v53, %v264_v34  ;;  %vm282_vm8 = vcmp.lt.s32.totalorder %v262_v23, 2 }
  0x6a   :  { %v268_v55 = vor.u32 %v267_v44, %v266_v35  ;;  %v271_v56 = vor.u32 %v270_v46, %v269_v37  ;;  %v274_v57 = vor.u32 %v273_v48, %v272_v38  ;;  %v279_v39 = vshrl.u32 %v636_v61, %v264_v34 }
  0x6b   :  { %v178_v45 = vsel %vm176_vm7, %v177_v50, %v837_v33  ;;  %v277_v47 = vor.u32 %v276_v52, %v275_v42  ;;  %vm283_vm9 = vcmp.lt.s32.totalorder %v262_v23, 3  ;;  %vm284_vm10 = vcmp.lt.s32.totalorder %v262_v23, 4 }
  0x6c   :  { %v179_v49 = vadd.s32 %v178_v45, %v174_v36  ;;  %v280_v51 = vor.u32 %v279_v39, %v278_v41  ;;  %v285_v53 = vsel %vm281_vm6, %v265_v43, %v268_v55  ;;  %v286_v58 = vsel %vm284_vm10, %v274_v57, 2102212464 }
  0x6d   :  { %v287_v59 = vsel %vm283_vm9, %v271_v56, %v286_v58  ;;  %v289_v60 = vsel %vm281_vm6, %v268_v55, %v271_v56  ;;  %v290_v61 = vsel %vm284_vm10, %v277_v47, 920167782  ;;  %v293_v63 = vsel %vm281_vm6, %v271_v56, %v274_v57 }
  0x6e   :  { %v180_v1 = vadd.s32 536870912, %v179_v49  ;;  %v291_v2 = vsel %vm283_vm9, %v274_v57, %v290_v61  ;;  %v294_v5 = vsel %vm284_vm10, %v280_v51, 1326507024  ;;  %v415_v6 = vstv %s840_s3 }
  0x6f   :  { %v288_v7 = vsel %vm282_vm8, %v285_v53, %v287_v59  ;;  %v292_v9 = vsel %vm282_vm8, %v289_v60, %v291_v2  ;;  %v295_v12 = vsel %vm283_vm9, %v277_v47, %v294_v5  ;;  %v417_v13 = vstv %s843_s15 }
  0x70   :  { %v865_v14 = vshrl.u32 %v180_v1, 30  ;;  %v296_v16 = vsel %vm282_vm8, %v293_v63, %v295_v12  ;;  %v869_v17 = vmul.u32.u64.low %v829_v28, %v292_v9  ;;  %v870_v18 = vmul.u32.u64.high %v829_v28, %v292_v9, %v869_v17 }
  0x71   :  { %v873_v19 = vmul.u32.u64.low %v829_v28, %v296_v16  ;;  %v874_v20 = vmul.u32.u64.high %v829_v28, %v296_v16, %v873_v19  ;;  %v416_v21 = vmul.f32 %v415_v6, %v696_v0  ;;  %v420_v25 = vstv %s848_s16 }
  0x72   :  { %v182_v24 = vshll.u32 %v865_v14, 30  ;;  %v424_v26 = vstv %s850_s17  ;;  %v304_v27 = vmul.u32 %v829_v28, %v288_v7  ;;  %v421_v23 = vmul.f32 %v420_v25, %v700_v3 }
  0x73   :  { %v418_v29 = vadd.f32 %v417_v13, %v416_v21  ;;  %v307_v34 = vadd.s32 1, %v870_v18  ;;  %v425_v35 = vmul.f32 %v424_v26, %v704_v4  ;;  %v428_v37 = vstv %s854_s18 }
  0x74   :  { %v183_v33 = vsub.s32 %v179_v49, %v182_v24  ;;  %vm306_vm11 = vc.u32 %v874_v20, %v869_v17  ;;  %v429_v41 = vmul.f32 %v428_v37, %v713_v8  ;;  %v432_v43 = vstv %s503_s19 }
  0x75   :  { %v308_v0 = vsel %vm306_vm11, %v307_v34, %v870_v18  ;;  %v422_v36 = vadd.f32 %v421_v23, %v418_v29  ;;  %v433_v3 = vmul.f32 %v432_v43, %v722_v11  ;;  %v175_v57 = vadd.s32 %v836_v32, %v833_v30 }
  0x76   :  { %v185_v38 = vsub.s32 0, %v183_v33  ;;  %v309_v42 = vadd.s32 %v308_v0, %v304_v27  ;;  %v205_v6 = vsub.s32 4, %v865_v14  ;;  %v305_v30 = vadd.s32 %v869_v17, %v874_v20 }
  0x77   :  { %v426_v44 = vadd.f32 %v425_v35, %v422_v36  ;;  %vm907_vm1 = vcmp.le.f32.partialorder %v249_v22, 0.7853982  ;;  %v406_v36 = vmul.f32 %v405_v62, %v818_v10  ;;  %vm211_vm5 = vweird.f32 %v783_v54 }
  0x78   :  { %v469_v28 = vmin.u32 %v185_v38, %v183_v33  ;;  %v310_v46 = vadd.s32 536870912, %v309_v42  ;;  %v206_v18 = vsel %vm121_vm14, %v205_v6, %v865_v14  ;;  %vm341_vm9 = vweird.f32 %v802_v15 }
  0x79   :  { %v430_v4 = vadd.f32 %v429_v41, %v426_v44  ;;  %v208_v17 = vsel %vm120_vm15, 0, %v206_v18 }
  0x7a   :  { %v187_v48 = vclz %v469_v28  ;;  %v889_v50 = vshrl.u32 %v310_v46, 30  ;;  %v212_v23 = vadd.s32 3, %v208_v17 }
  0x7b   :  { %v892_v56 = vadd.f32 %v433_v3, %v430_v4  ;;  %v407_v3 = vmul.f32 1.442695, %v406_v36 }
  0x7c   :  { %v470_v52 = vadd.s32 4294967294, %v187_v48  ;;  %v312_v55 = vshll.u32 %v889_v50, 30  ;;  %v213_v35 = vand.u32 3, %v212_v23  ;;  %v335_v38 = vsub.s32 4, %v889_v50 }
  0x7d   :  { %v223_v48 = vstv %s461_s20 }
  0x7e   :  { %vm471_vm12 = vcmp.lt.s32.totalorder %v470_v52, 0  ;;  %v313_v39 = vsub.s32 %v309_v42, %v312_v55  ;;  %vm218_vm2 = vcmp.eq.s32.totalorder %v213_v35, 2  ;;  %vm215_vm3 = vcmp.eq.s32.totalorder %v213_v35, 0 }
  0x7f   :  { %v190_v8 = vsel %vm471_vm12, 0, %v470_v52  ;;  %v336_v22 = vsel %vm251_vm0, %v335_v38, %v889_v50  ;;  %vm214_vm4 = vcmp.lt.s32.totalorder %v213_v35, 2 }
  0x80   :  { %v191_v45 = vsub.s32 32, %v190_v8  ;;  %v192_v47 = vshll.u32 %v183_v33, %v190_v8  ;;  %v195_v49 = vsub.s32 4294967266, %v190_v8  ;;  %v315_v51 = vsub.s32 0, %v313_v39 }
  0x81   :  { %v338_v4 = vsel %vm907_vm1, 0, %v336_v22 }
  0x82   :  { %v193_v11 = vshrl.u32 %v175_v57, %v191_v45  ;;  %v196_v53 = vadd.s32 127, %v195_v49  ;;  %v480_v58 = vmin.u32 %v315_v51, %v313_v39  ;;  %v342_v50 = vand.u32 3, %v338_v4 }
  0x84   :  { %v194_v59 = vor.u32 %v193_v11, %v192_v47  ;;  %v197_v60 = vshll.u32 %v196_v53, 23  ;;  %v317_v61 = vclz %v480_v58  ;;  %vm347_vm6 = vcmp.eq.s32.totalorder %v342_v50, 2 }
  0x85   :  { %vm344_vm7 = vcmp.eq.s32.totalorder %v342_v50, 0  ;;  %vm343_vm8 = vcmp.lt.s32.totalorder %v342_v50, 2  ;;  %v352_v11 = vstv %s472_s21  ;;  %v379_v53 = vstv %s483_s22 }
  0x86   :  { %v198_v63 = vor.u32 4788187, %v197_v60  ;;  %v201_v1 = vcvt.s32.f32 %v194_v59  ;;  %v481_v2 = vadd.s32 4294967294, %v317_v61 }
  0x88   :  { %v199_v5 = vand.u32 2147483647, %v198_v63  ;;  %vm482_vm13 = vcmp.lt.s32.totalorder %v481_v2, 0 }
  0x89   :  { %v320_v7 = vsel %vm482_vm13, 0, %v481_v2  ;;  %v436_v2 = vstv %s497_s24 }
  0x8a   :  { %v202_v32 = vmul.f32 %v201_v1, %v199_v5  ;;  %v321_v9 = vsub.s32 32, %v320_v7  ;;  %v322_v12 = vshll.u32 %v313_v39, %v320_v7  ;;  %v325_v13 = vsub.s32 4294967266, %v320_v7 }
  0x8b   :  { %v435_v1 = vmul.f32 %v892_v56, %v892_v56 }
  0x8c   :  { %v203_v16 = vxor.u32 2147483648, %v202_v32  ;;  %v323_v19 = vshrl.u32 %v305_v30, %v321_v9  ;;  %v326_v21 = vadd.s32 127, %v325_v13 }
  0x8e   :  { %v204_v24 = vsel %vm121_vm14, %v203_v16, %v202_v32  ;;  %v324_v20 = vor.u32 %v323_v19, %v322_v12  ;;  %v327_v26 = vshll.u32 %v326_v21, 23  ;;  %v437_v32 = vmul.f32 %v436_v2, %v435_v1 }
  0x8f   :  { %v207_v25 = vsel %vm120_vm15, %v783_v54, %v204_v24 }
  0x90   :  { %525 = vcosq.f32 %v207_v25  ;;  %v328_v27 = vor.u32 4788187, %v327_v26  ;;  %v331_v29 = vcvt.s32.f32 %v324_v20 }
  0x91   :  { %527 = vsinq.f32 %v207_v25 }
  0x92   :  { %v329_v33 = vand.u32 2147483647, %v328_v27 }
  0x94   :  { %v332_v34 = vmul.f32 %v331_v29, %v329_v33 }
  0x96   :  { %v333_v37 = vxor.u32 2147483648, %v332_v34 }
  0x98   :  { %v334_v0 = vsel %vm251_vm0, %v333_v37, %v332_v34 }
  0x99   :  { %v337_v41 = vsel %vm907_vm1, %v802_v15, %v334_v0 }
  0x9a   :  { %v526_v42 = vpop.eup %525  ;;  %529 = vcosq.f32 %v337_v41 }
  0x9b   :  { %v528_v43 = vpop.eup %527  ;;  %v219_v28 = vxor.u32 2147483648, %v526_v42  ;;  %531 = vsinq.f32 %v337_v41 }
  0x9c   :  { %v216_v44 = vxor.u32 2147483648, %v528_v43  ;;  %533 = vtanh.f32 %v812_v31 }
  0x9d   :  { %v220_v46 = vsel %vm218_vm2, %v219_v28, %v528_v43  ;;  %535 = vpow2.f32 %v407_v3 }
  0x9e   :  { %v217_v10 = vsel %vm215_vm3, %v526_v42, %v216_v44 }
  0x9f   :  { %v221_v52 = vsel %vm214_vm4, %v217_v10, %v220_v46 }
  0xa0   :  { %v222_v55 = vsel %vm211_vm5, nan, %v221_v52 }
  0xa1   :  { %v224_v57 = vmul.f32 %v223_v48, %v222_v55 }
  0xa3   :  { %v225_v8 = vadd.f32 %v224_v57, %v768_v40  ;;  %v409_v40 = vstv %s490_s23 }
  0xa4   :  { %v530_v54 = vpop.eup %529 }
  0xa5   :  { %v532_v39 = vpop.eup %531  ;;  %v348_v45 = vxor.u32 2147483648, %v530_v54 }
  0xa6   :  { %v345_v47 = vxor.u32 2147483648, %v532_v39  ;;  %v534_v49 = vpop.eup %533 }
  0xa7   :  { %v349_v31 = vsel %vm347_vm6, %v348_v45, %v532_v39  ;;  %v536_v59 = vpop.eup %535  ;;  %v380_v63 = vmul.f32 %v534_v49, %v379_v53 }
  0xa8   :  { %v346_v51 = vsel %vm344_vm7, %v530_v54, %v345_v47  ;;  %v410_v6 = vmul.f32 %v536_v59, %v409_v40 }
  0xa9   :  { %v350_v58 = vsel %vm343_vm8, %v346_v51, %v349_v31 }
  0xaa   :  { %v351_v60 = vsel %vm341_vm9, nan, %v350_v58 }
  0xab   :  { %v353_v61 = vmul.f32 %v352_v11, %v351_v60 }
  0xad   :  { %v354_v5 = vadd.f32 %v353_v61, %v225_v8 }
  0xaf   :  { %v381_v30 = vadd.f32 %v380_v63, %v354_v5 }
  0xb1   :  { %v411_v15 = vadd.f32 %v410_v6, %v381_v30 }
  0xb3   :  { %v438_v7 = vadd.f32 %v437_v32, %v411_v15 }
  0xb5   :  { %439 = vst [vmem:[#allocation10] sm:$0xff] %v438_v7 }
  0xb6   :  { %606 = shalt.err (!%p603_p13)
}
  0xb7   :  { %s607_s29 = scalar_lea.hbm %s941_s4, 128 }
  0xb8   :  { %p608_p0 = scmp.ne.s32.totalorder %s941_s4, %s607_s29  ;;  %p611_p1 = scmp.lt.u32.totalorder %s607_s29, %s941_s4 }
  0xba   :  { %p613_p2 = pnand %p611_p1, %p608_p0 }
  0xbc   :  { %616 = shalt.err (!%p613_p2)
}
  0xbd   :  { %449 = dma.vmem_to_hbm [thread:$0]  %s447_s2, 128, %s941_s4, [#allocation4]  }
  0xbe   :  { %623 = dma.done.wait [#allocation4], 128  }
  0xbf   :  { %624 = vsyncadd [#allocation4], 4294967168 }
  0xc0   :  { %453 = vsyncpa [#allocation3], 1 }
  0xc1   :  { %454 = vsyncpa [#allocation4], 1 }
  0xc2   :  { %455 = vsyncpa [#allocation5], 1 }
  0xc3   :  { %456 = vsyncpa [#allocation8], 1 }

</bundles_post_ra>
